<compile_context>
chip_gen: v7x
topology: tpu7x:2x2x1
jax: 0.10.0
libtpu: 0.0.40
codegen_flags: <defaults>
</compile_context>

<pallas_src>
import functools

import jax
import jax.numpy as jnp
from jax.experimental import pallas as pl
from jax.experimental.pallas import tpu as pltpu

SUBLANE = 8                         # vreg sublane width: batch tiles are multiples of this
_VMEM_BUDGET_BYTES = 32 * 2**20     # conservative plan budget (v7x has 64 MiB physical)
_VMEM_LIMIT_BYTES = 48 * 2**20      # scoped VMEM limit passed to Mosaic
_MAX_TB = 16384                     # cap on the batch tile


def _round_up(x, m):
    return ((x + m - 1) // m) * m


def _pick_act_dtype():
    """bf16 bias/ReLU epilogue on v6e/v7x (native bf16 VPU); f32 elsewhere."""
    try:
        kind = jax.devices()[0].device_kind.lower()
    except Exception:
        return jnp.float32
    for tag in ("v2", "v3", "v4", "v5"):
        if tag in kind:
            return jnp.float32
    return jnp.bfloat16


def _choose_tb(batch, plan_bytes, block_batch):
    """Pick the batch tile: grow toward the VMEM budget, shrink if over, and
    make sure a non-tiny batch produces >= 2 grid steps (v7x has 2 TCs)."""
    cap = min(_MAX_TB, _round_up(batch, SUBLANE))
    tb = min(_round_up(max(block_batch, SUBLANE), SUBLANE), cap)
    # Grow: bigger tiles amortize the ~0.35 us fixed per-grid-step overhead.
    while tb < cap and plan_bytes(min(2 * tb, cap)) <= _VMEM_BUDGET_BYTES:
        tb = min(2 * tb, cap)
    # Shrink if over budget.
    while tb > SUBLANE and plan_bytes(tb) > _VMEM_BUDGET_BYTES:
        tb = max(SUBLANE, _round_up(tb // 2, SUBLANE))
    # If the tile overshoots the batch, use a full-array block in the batch dim
    # (block dims equal to the full array dims are always legal).
    if tb >= batch:
        tb = batch
    # v7x: two TensorCores share the "parallel" batch grid -> prefer >= 2 steps.
    if (batch + tb - 1) // tb == 1 and batch > 2 * SUBLANE:
        tb = _round_up((batch + 1) // 2, SUBLANE)
    return tb


def _mlp_block_kernel(n_hidden_layers, act_dtype, *refs):
    """Fused MLP chain on one (tb, attr_dim) batch tile.

    refs = (x_ref,
            w0, b0, ..., w_{L-1}, b_{L-1},   # hidden Linear+ReLU layers
            wp, bp,                          # predictor Linear (no activation)
            o_ref)
    Dots accumulate in f32 on the MXU; the bias/ReLU epilogue runs in act_dtype.
    """
    x_ref = refs[0]
    o_ref = refs[-1]
    p = refs[1:-1]

    h = x_ref[...]                       # (tb, attr_dim), input dtype
    n_layers = n_hidden_layers + 1       # hidden layers + predictor
    for layer in range(n_layers):
        w = p[2 * layer][...]
        b = p[2 * layer + 1][...]
        # Single cast of the activations to the weight dtype (bf16) for the MXU.
        acc = jnp.dot(h.astype(w.dtype), w, preferred_element_type=jnp.float32)
        acc = acc.astype(act_dtype) + b.astype(act_dtype)
        if layer < n_hidden_layers:
            acc = jnp.maximum(acc, 0.0)  # ReLU (MLP_layer); predictor has none
        h = acc

    # Output is written unpadded (masked vst); the bytes are exactly the useful
    # bytes.  (A (tb/16,128) lane-dense repack would tighten the DMA further
    # but complicates partial last blocks; total output bytes are already small.)
    o_ref[...] = h.astype(o_ref.dtype)


@functools.partial(jax.jit, static_argnames=("block_batch", "weight_dtype", "act_dtype"))
def mlp_block_forward(attr, params, *, block_batch=4096,
                      weight_dtype=jnp.bfloat16, act_dtype=jnp.float32):
    """attr: (B, attr_dim).  params: list of (W (in, out), b (1, out)); the last
    pair is the predictor.  Returns (B, out_dim) in attr.dtype."""
    n_hidden_layers = len(params) - 1
    batch, attr_dim = attr.shape
    out_dim = params[-1][0].shape[1]

    # ---- cast weights once (bf16) and flatten; biases stay f32 in HBM ----
    flat = []
    weight_bytes = 0
    for w, b in params:
        w_c = w.astype(weight_dtype)
        b_c = jnp.asarray(b, jnp.float32).reshape(1, -1)
        flat.extend([w_c, b_c])
        weight_bytes += w_c.size * w_c.dtype.itemsize + b_c.size * 4

    max_feat = max([attr_dim] + [w.shape[1] for w, _ in params])

    # ---- choose the batch tile against a conservative VMEM plan ----
    def plan_bytes(tb_):
        io = 2 * tb_ * (attr_dim + out_dim) * attr.dtype.itemsize  # dbl-buffered tiles
        act = 4 * tb_ * max_feat * 4                               # live f32 activations
        return 2 * weight_bytes + io + act

    tb = _choose_tb(batch, plan_bytes, block_batch)
    num_steps = pl.cdiv(batch, tb)

    # ---- specs: x/out tiled over the batch; params resident (constant map) ----
    in_specs = [pl.BlockSpec((tb, attr_dim), lambda i: (i, 0))]
    for prm in flat:
        in_specs.append(pl.BlockSpec(prm.shape, lambda i: (0, 0)))
    out_spec = pl.BlockSpec((tb, out_dim), lambda i: (i, 0))

    flops = 2 * batch * sum(w.shape[0] * w.shape[1] for w, _ in params)
    bytes_accessed = (attr.size * attr.dtype.itemsize
                      + batch * out_dim * attr.dtype.itemsize
                      + weight_bytes)

    kernel = functools.partial(_mlp_block_kernel, n_hidden_layers, act_dtype)

    return pl.pallas_call(
        kernel,
        out_shape=jax.ShapeDtypeStruct((batch, out_dim), attr.dtype),
        grid=(num_steps,),
        in_specs=in_specs,
        out_specs=out_spec,
        compiler_params=pltpu.CompilerParams(
            dimension_semantics=("parallel",),   # megacore / v7x 2-TC sharding
            vmem_limit_bytes=_VMEM_LIMIT_BYTES,
        ),
        cost_estimate=pl.CostEstimate(flops=flops, transcendentals=0,
                                      bytes_accessed=bytes_accessed),
    )(attr, *flat)


def _reference(attr, params, weight_dtype=jnp.bfloat16, act_dtype=jnp.float32):
    """Pure-JAX reference using the same numerical recipe as the kernel."""
    h = attr
    last = len(params) - 1
    for idx, (w, b) in enumerate(params):
        acc = jnp.dot(h.astype(weight_dtype), w.astype(weight_dtype),
                      preferred_element_type=jnp.float32)
        acc = acc.astype(act_dtype) + jnp.asarray(b, jnp.float32).reshape(1, -1).astype(act_dtype)
        if idx != last:
            acc = jnp.maximum(acc, 0.0)
        h = acc
    return h.astype(attr.dtype)


def init_params(key, attr_dim, nf_particle, n_layers, output_dim):
    """Deterministic parameter init mirroring the module's __init__ shapes."""
    dims = [(attr_dim, nf_particle)]                      # first MLP_layer
    dims += [(nf_particle, nf_particle)] * n_layers       # hidden MLP_layers
    dims += [(nf_particle, output_dim)]                   # predictor Linear
    params = []
    for (d_in, d_out) in dims:
        key, kw, kb = jax.random.split(key, 3)
        bound = 1.0 / jnp.sqrt(d_in)
        w = jax.random.uniform(kw, (d_in, d_out), jnp.float32, -bound, bound)
        b = jax.random.uniform(kb, (1, d_out), jnp.float32, -bound, bound)
        params.append((w, b))
    return params


if __name__ == "__main__":
    # Small synthetic config consistent with the module's __init__:
    #   state_dim=8, max_nobj=4  -> dim_of_work_space = 2
    #   n_history=2              -> attr_dim   = 4 * 2 * 2 * 2 = 32
    #                               output_dim = 4 * 2         = 8
    #   nf_particle=32, layers=2
    max_nobj = 4
    state_dim = 8
    n_history = 2
    nf_particle = 32
    n_layers = 2

    dim_of_work_space = state_dim // max_nobj
    attr_dim = max_nobj * n_history * dim_of_work_space * 2
    output_dim = max_nobj * dim_of_work_space

    key = jax.random.PRNGKey(0)
    key, kx, kx2 = jax.random.split(key, 3)
    params = init_params(key, attr_dim, nf_particle, n_layers, output_dim)

    # --- small batch (single full-array block) ---
    batch = 2
    attr = jax.random.normal(kx, (batch, attr_dim), jnp.float32)
    out = jax.block_until_ready(mlp_block_forward(attr, params))
    ref = _reference(attr, params)
    assert out.shape == (batch, output_dim)
    assert jnp.allclose(out, ref, atol=1e-3, rtol=1e-3)

    # --- larger ragged batch (multi-step grid + partial last block, no padding) ---
    batch2 = 300
    attr2 = jax.random.normal(kx2, (batch2, attr_dim), jnp.float32)
    out2 = jax.block_until_ready(mlp_block_forward(attr2, params, block_batch=128))
    ref2 = _reference(attr2, params)
    assert out2.shape == (batch2, output_dim)
    assert jnp.allclose(out2, ref2, atol=1e-3, rtol=1e-3)

    # --- chip-appropriate epilogue dtype (bf16 on v6e/v7x, f32 on v5e) ---
    act = _pick_act_dtype()
    out3 = jax.block_until_ready(mlp_block_forward(attr2, params, act_dtype=act))
    ref3 = _reference(attr2, params, act_dtype=act)
    assert out3.shape == (batch2, output_dim)
    assert jnp.allclose(out3, ref3, atol=2e-2, rtol=2e-2)

    print("KERNEL_OK")
</pallas_src>

<mosaic_0001>
module attributes {stable_mosaic.version = 11 : i64} {
  func.func @_mlp_block_kernel(%arg0: i32, %arg1: memref<2x32xf32, #tpu.memory_space<vmem>>, %arg2: memref<32x32xbf16, #tpu.memory_space<vmem>>, %arg3: memref<1x32xf32, #tpu.memory_space<vmem>>, %arg4: memref<32x32xbf16, #tpu.memory_space<vmem>>, %arg5: memref<1x32xf32, #tpu.memory_space<vmem>>, %arg6: memref<32x32xbf16, #tpu.memory_space<vmem>>, %arg7: memref<1x32xf32, #tpu.memory_space<vmem>>, %arg8: memref<32x8xbf16, #tpu.memory_space<vmem>>, %arg9: memref<1x8xf32, #tpu.memory_space<vmem>>, %arg10: memref<2x8xf32, #tpu.memory_space<vmem>>) attributes {dimension_semantics = [#tpu.dimension_semantics<parallel>], iteration_bounds = array<i64: 1>, scalar_prefetch = 0 : i64, scratch_operands = 0 : i64, tpu.core_type = #tpu.core_type<tc>, window_params = [{transform_indices = @transform_0, window_bounds = array<i64: 2, 32>}, {pipeline_mode = #tpu.pipeline_mode<synchronous>, transform_indices = @transform_1, window_bounds = array<i64: 32, 32>}, {pipeline_mode = #tpu.pipeline_mode<synchronous>, transform_indices = @transform_2, window_bounds = array<i64: 1, 32>}, {pipeline_mode = #tpu.pipeline_mode<synchronous>, transform_indices = @transform_3, window_bounds = array<i64: 32, 32>}, {pipeline_mode = #tpu.pipeline_mode<synchronous>, transform_indices = @transform_4, window_bounds = array<i64: 1, 32>}, {pipeline_mode = #tpu.pipeline_mode<synchronous>, transform_indices = @transform_5, window_bounds = array<i64: 32, 32>}, {pipeline_mode = #tpu.pipeline_mode<synchronous>, transform_indices = @transform_6, window_bounds = array<i64: 1, 32>}, {pipeline_mode = #tpu.pipeline_mode<synchronous>, transform_indices = @transform_7, window_bounds = array<i64: 32, 8>}, {pipeline_mode = #tpu.pipeline_mode<synchronous>, transform_indices = @transform_8, window_bounds = array<i64: 1, 8>}, {transform_indices = @transform_9, window_bounds = array<i64: 2, 8>}]} {
    %c0 = arith.constant 0 : index
    %c0_0 = arith.constant 0 : index
    %0 = vector.load %arg1[%c0, %c0_0] : memref<2x32xf32, #tpu.memory_space<vmem>>, vector<2x32xf32>
    %c0_1 = arith.constant 0 : index
    %c0_2 = arith.constant 0 : index
    %1 = vector.load %arg2[%c0_1, %c0_2] : memref<32x32xbf16, #tpu.memory_space<vmem>>, vector<32x32xbf16>
    %c0_3 = arith.constant 0 : index
    %c0_4 = arith.constant 0 : index
    %2 = vector.load %arg3[%c0_3, %c0_4] : memref<1x32xf32, #tpu.memory_space<vmem>>, vector<1x32xf32>
    %3 = arith.truncf %0 : vector<2x32xf32> to vector<2x32xbf16>
    %cst = arith.constant dense<0.000000e+00> : vector<2x32xf32>
    %4 = tpu.matmul %3, %1, %cst {dimension_numbers = #tpu.dot_dimension_numbers<[1], [0], [0], [1], [0, 0, 1, 1], [], []>} : vector<2x32xbf16>, vector<32x32xbf16>, vector<2x32xf32> -> vector<2x32xf32>
    %5 = vector.broadcast %2 : vector<1x32xf32> to vector<2x32xf32>
    %6 = arith.addf %4, %5 : vector<2x32xf32>
    %cst_5 = arith.constant 0.000000e+00 : f32
    %7 = vector.broadcast %cst_5 : f32 to vector<2x32xf32>
    %8 = arith.maximumf %6, %7 : vector<2x32xf32>
    %c0_6 = arith.constant 0 : index
    %c0_7 = arith.constant 0 : index
    %9 = vector.load %arg4[%c0_6, %c0_7] : memref<32x32xbf16, #tpu.memory_space<vmem>>, vector<32x32xbf16>
    %c0_8 = arith.constant 0 : index
    %c0_9 = arith.constant 0 : index
    %10 = vector.load %arg5[%c0_8, %c0_9] : memref<1x32xf32, #tpu.memory_space<vmem>>, vector<1x32xf32>
    %11 = arith.truncf %8 : vector<2x32xf32> to vector<2x32xbf16>
    %cst_10 = arith.constant dense<0.000000e+00> : vector<2x32xf32>
    %12 = tpu.matmul %11, %9, %cst_10 {dimension_numbers = #tpu.dot_dimension_numbers<[1], [0], [0], [1], [0, 0, 1, 1], [], []>} : vector<2x32xbf16>, vector<32x32xbf16>, vector<2x32xf32> -> vector<2x32xf32>
    %13 = vector.broadcast %10 : vector<1x32xf32> to vector<2x32xf32>
    %14 = arith.addf %12, %13 : vector<2x32xf32>
    %cst_11 = arith.constant 0.000000e+00 : f32
    %15 = vector.broadcast %cst_11 : f32 to vector<2x32xf32>
    %16 = arith.maximumf %14, %15 : vector<2x32xf32>
    %c0_12 = arith.constant 0 : index
    %c0_13 = arith.constant 0 : index
    %17 = vector.load %arg6[%c0_12, %c0_13] : memref<32x32xbf16, #tpu.memory_space<vmem>>, vector<32x32xbf16>
    %c0_14 = arith.constant 0 : index
    %c0_15 = arith.constant 0 : index
    %18 = vector.load %arg7[%c0_14, %c0_15] : memref<1x32xf32, #tpu.memory_space<vmem>>, vector<1x32xf32>
    %19 = arith.truncf %16 : vector<2x32xf32> to vector<2x32xbf16>
    %cst_16 = arith.constant dense<0.000000e+00> : vector<2x32xf32>
    %20 = tpu.matmul %19, %17, %cst_16 {dimension_numbers = #tpu.dot_dimension_numbers<[1], [0], [0], [1], [0, 0, 1, 1], [], []>} : vector<2x32xbf16>, vector<32x32xbf16>, vector<2x32xf32> -> vector<2x32xf32>
    %21 = vector.broadcast %18 : vector<1x32xf32> to vector<2x32xf32>
    %22 = arith.addf %20, %21 : vector<2x32xf32>
    %cst_17 = arith.constant 0.000000e+00 : f32
    %23 = vector.broadcast %cst_17 : f32 to vector<2x32xf32>
    %24 = arith.maximumf %22, %23 : vector<2x32xf32>
    %c0_18 = arith.constant 0 : index
    %c0_19 = arith.constant 0 : index
    %25 = vector.load %arg8[%c0_18, %c0_19] : memref<32x8xbf16, #tpu.memory_space<vmem>>, vector<32x8xbf16>
    %c0_20 = arith.constant 0 : index
    %c0_21 = arith.constant 0 : index
    %26 = vector.load %arg9[%c0_20, %c0_21] : memref<1x8xf32, #tpu.memory_space<vmem>>, vector<1x8xf32>
    %27 = arith.truncf %24 : vector<2x32xf32> to vector<2x32xbf16>
    %cst_22 = arith.constant dense<0.000000e+00> : vector<2x8xf32>
    %28 = tpu.matmul %27, %25, %cst_22 {dimension_numbers = #tpu.dot_dimension_numbers<[1], [0], [0], [1], [0, 0, 1, 1], [], []>} : vector<2x32xbf16>, vector<32x8xbf16>, vector<2x8xf32> -> vector<2x8xf32>
    %29 = vector.broadcast %26 : vector<1x8xf32> to vector<2x8xf32>
    %30 = arith.addf %28, %29 : vector<2x8xf32>
    %c0_23 = arith.constant 0 : index
    %c0_24 = arith.constant 0 : index
    %31 = vector.load %arg10[%c0_23, %c0_24] : memref<2x8xf32, #tpu.memory_space<vmem>>, vector<2x8xf32>
    tpu.vector_store %arg10[%c0_23, %c0_24], %30 {strides = array<i32>} : memref<2x8xf32, #tpu.memory_space<vmem>>, vector<2x8xf32>,
    return
  }
  func.func @transform_0(%arg0: i32) -> (i32, i32) {
    %c0_i32 = arith.constant 0 : i32
    %c0_i32_0 = arith.constant 0 : i32
    return %arg0, %c0_i32 : i32, i32
  }
  func.func @transform_1(%arg0: i32) -> (i32, i32) {
    %c0_i32 = arith.constant 0 : i32
    %c0_i32_0 = arith.constant 0 : i32
    %c0_i32_1 = arith.constant 0 : i32
    return %c0_i32, %c0_i32_0 : i32, i32
  }
  func.func @transform_2(%arg0: i32) -> (i32, i32) {
    %c0_i32 = arith.constant 0 : i32
    %c0_i32_0 = arith.constant 0 : i32
    %c0_i32_1 = arith.constant 0 : i32
    return %c0_i32, %c0_i32_0 : i32, i32
  }
  func.func @transform_3(%arg0: i32) -> (i32, i32) {
    %c0_i32 = arith.constant 0 : i32
    %c0_i32_0 = arith.constant 0 : i32
    %c0_i32_1 = arith.constant 0 : i32
    return %c0_i32, %c0_i32_0 : i32, i32
  }
  func.func @transform_4(%arg0: i32) -> (i32, i32) {
    %c0_i32 = arith.constant 0 : i32
    %c0_i32_0 = arith.constant 0 : i32
    %c0_i32_1 = arith.constant 0 : i32
    return %c0_i32, %c0_i32_0 : i32, i32
  }
  func.func @transform_5(%arg0: i32) -> (i32, i32) {
    %c0_i32 = arith.constant 0 : i32
    %c0_i32_0 = arith.constant 0 : i32
    %c0_i32_1 = arith.constant 0 : i32
    return %c0_i32, %c0_i32_0 : i32, i32
  }
  func.func @transform_6(%arg0: i32) -> (i32, i32) {
    %c0_i32 = arith.constant 0 : i32
    %c0_i32_0 = arith.constant 0 : i32
    %c0_i32_1 = arith.constant 0 : i32
    return %c0_i32, %c0_i32_0 : i32, i32
  }
  func.func @transform_7(%arg0: i32) -> (i32, i32) {
    %c0_i32 = arith.constant 0 : i32
    %c0_i32_0 = arith.constant 0 : i32
    %c0_i32_1 = arith.constant 0 : i32
    return %c0_i32, %c0_i32_0 : i32, i32
  }
  func.func @transform_8(%arg0: i32) -> (i32, i32) {
    %c0_i32 = arith.constant 0 : i32
    %c0_i32_0 = arith.constant 0 : i32
    %c0_i32_1 = arith.constant 0 : i32
    return %c0_i32, %c0_i32_0 : i32, i32
  }
  func.func @transform_9(%arg0: i32) -> (i32, i32) {
    %c0_i32 = arith.constant 0 : i32
    %c0_i32_0 = arith.constant 0 : i32
    return %arg0, %c0_i32 : i32, i32
  }
}

</mosaic_0001>

<bundles_post_ra>
// kernel: mlp_block_forward.1
= control target key start
LH: loop header
LB: loop body
LE: loop exit
PB: predicated region body
PF: predicated region fallthrough
CT: control target
= control target key end

     0   :  { %v418_v1 = vmov 0.0   ;;  %vm419_vm0 = vmmov 0   ;;  %vm59_vm1 = vcmask 261120   ;;  %s530_s0 = inlined_call_operand.vmem [shape: f32[2,32], index: 0, kind: input, shape index: {}]   ;;  %s531_s1 = inlined_call_operand.vmem [shape: bf16[32,32], index: 1, kind: input, shape index: {}]   ;;  %s532_s2 = inlined_call_operand.vmem [shape: f32[1,32], index: 2, kind: input, shape index: {}]   ;;  %s533_s3 = inlined_call_operand.vmem [shape: bf16[32,32], index: 3, kind: input, shape index: {}]   ;;  %s534_s4 = inlined_call_operand.vmem [shape: f32[1,32], index: 4, kind: input, shape index: {}]   ;;  %s535_s5 = inlined_call_operand.vmem [shape: bf16[32,32], index: 5, kind: input, shape index: {}]   ;;  %s536_s6 = inlined_call_operand.vmem [shape: f32[1,32], index: 6, kind: input, shape index: {}]   ;;  %s537_s7 = inlined_call_operand.vmem [shape: bf16[32,8], index: 7, kind: input, shape index: {}]   ;;  %s538_s8 = inlined_call_operand.vmem [shape: f32[1,8], index: 8, kind: input, shape index: {}]   ;;  %s539_s9 = inlined_call_operand.hbm [shape: f32[2,8], index: 9, kind: output, shape index: {}]  }
   0x1   :  { %v386_v0 = vld [vmem:[%s531_s1] sm:$0xff]   ;;  %351 = vmatprep.subr.bf16.mxu0 %v418_v1  ;;  %359 = vmatprep.subr.bf16.mxu1 %v418_v1  ;;  %v387_v2 = vld [vmem:[%s531_s1 + $0x8] sm:$0xff]  }
   0x2   :  { %352 = vmatpush3.bf16.msra.mxu0 %v386_v0  ;;  %355 = vmatprep.mubr.msk.bf16.mxu0 %vm419_vm0, %v418_v1  ;;  %v34_v3 = vld [vmem:[%s530_s0] sm:$0x3] }
   0x3   :  { %353 = vmatprep.subr.bf16.mxu0 %v418_v1  ;;  %363 = vmatprep.mubr.msk.bf16.mxu1 %vm419_vm0, %v418_v1  ;;  %v40_v4 = vpack.c.bf16 %v34_v3, %v34_v3 }
   0x6   :  { %354 = vmatpush3.bf16.msra.mxu0 %v387_v2 }
   0x7   :  { %367 = vmatprep.subr.bf16.mxu0 %v418_v1 }
   0x8   :  { %14 = vsyncpa [#allocation3], 0  ;;  %v388_v5 = vld [vmem:[%s533_s3] sm:$0xff]   ;;  %v389_v6 = vld [vmem:[%s533_s3 + $0x8] sm:$0xff]   ;;  %s420_s29 = smov [#allocation2]   ;;  %vm307_vm2 = vcmask 58368  }
   0x9   :  { %356 = vmatmul.mubr.msk.bf16.vlgmr.msra.gmra.mrb[0].mxu0 %vm59_vm1, %v40_v4  ;;  %360 = vmatpush3.bf16.msra.mxu1 %v388_v5  ;;  %v390_v7 = vld [vmem:[%s535_s5] sm:$0xff]   ;;  %v391_v16 = vld [vmem:[%s535_s5 + $0x8] sm:$0xff]  }
   0xa   :  { %371 = vmatprep.mubr.msk.bf16.mxu0 %vm419_vm0, %v418_v1  ;;  %361 = vmatprep.subr.bf16.mxu1 %v418_v1  ;;  %v323_v8 = vld [vmem:[%s532_s2] ss:$0 sm:$0xff]  ;;  %v393_v26 = vld [vmem:[%s537_s7 + $0x8] sm:$0xff]  }
   0xb   :  { %368 = vmatpush3.bf16.msra.mxu0 %v390_v7  ;;  %v392_v17 = vld [vmem:[%s537_s7] sm:$0xff]   ;;  %s315_s7 = sshll.u32 %s420_s29, 4  ;;  %s316_s7 = int_to_ptr.vmem [resolvable:$true] %s315_s7 }
   0xc   :  { %369 = vmatprep.subr.bf16.mxu0 %v418_v1  ;;  %v327_v18 = vld [vmem:[%s534_s4] ss:$0 sm:$0xff]  ;;  %p399_p1 = scmp.lt.s32.totalorder %s316_s7, %s316_s7 }
   0xd   :  { %362 = vmatpush3.bf16.msra.mxu1 %v389_v6  ;;  %v331_v27 = vld [vmem:[%s536_s6] ss:$0 sm:$0xff]  ;;  %s394_s6 = scalar_lea.vmem %s316_s7, 32 }
   0xe   :  { %375 = vmatprep.subr.bf16.mxu1 %v418_v1  ;;  %v335_v35 = vld [vmem:[%s538_s8] ss:$0 sm:$0xff]  ;;  %p395_p0 = scmp.ne.s32.totalorder %s316_s7, %s394_s6  ;;  %p400_p2 = scmp.lt.s32.totalorder %s394_s6, %s394_s6 }
   0xf   :  { %370 = vmatpush3.bf16.msra.mxu0 %v391_v16 }
  0x10   :  { %p401_p3 = por %p400_p2, %p399_p1 }
  0x12   :  { %p402_p4 = pnand %p401_p3, %p395_p0 }
  0xdc   :  { %v97_v9 = vpop.f32.mrb[0].mxu0 }
  0xdd   :  { %v98_v10 = vadd.f32 %v323_v8, %v97_v9  ;;  %v357_v11 = vpop.f32.mrb[1].mxu0 }
  0xde   :  { %v100_v12 = vpop.f32.mrb[2].mxu0 }
  0xdf   :  { %v103_v13 = vmax.f32 %v98_v10, 0.0  ;;  %v358_v14 = vpop.f32.mrb[3].mxu0 }
  0xe1   :  { %v109_v15 = vpack.c.bf16 %v103_v13, %v103_v13 }
  0xe3   :  { %364 = vmatmul.mubr.msk.bf16.vlgmr.msra.gmra.mrb[0].mxu1 %vm59_vm1, %v109_v15 }
  0xe4   :  { %379 = vmatprep.mubr.msk.bf16.mxu1 %vm419_vm0, %v418_v1  ;;  %376 = vmatpush3.bf16.msra.mxu1 %v392_v17 }
  0xe5   :  { %377 = vmatprep.subr.bf16.mxu1 %v418_v1 }
  0xe8   :  { %378 = vmatpush3.bf16.msra.mxu1 %v393_v26 }
 0x1b6   :  { %v165_v19 = vpop.f32.mrb[0].mxu1 }
 0x1b7   :  { %v166_v20 = vadd.f32 %v327_v18, %v165_v19  ;;  %v365_v21 = vpop.f32.mrb[1].mxu1 }
 0x1b8   :  { %v168_v22 = vpop.f32.mrb[2].mxu1 }
 0x1b9   :  { %v171_v23 = vmax.f32 %v166_v20, 0.0  ;;  %v366_v24 = vpop.f32.mrb[3].mxu1 }
 0x1bb   :  { %v177_v25 = vpack.c.bf16 %v171_v23, %v171_v23 }
 0x1bd   :  { %372 = vmatmul.mubr.msk.bf16.vlgmr.msra.gmra.mrb[4].mxu0 %vm59_vm1, %v177_v25 }
 0x290   :  { %v233_v28 = vpop.f32.mrb[4].mxu0 }
 0x291   :  { %v234_v29 = vadd.f32 %v331_v27, %v233_v28  ;;  %v373_v30 = vpop.f32.mrb[5].mxu0 }
 0x292   :  { %v236_v31 = vpop.f32.mrb[6].mxu0 }
 0x293   :  { %v239_v32 = vmax.f32 %v234_v29, 0.0  ;;  %v374_v33 = vpop.f32.mrb[7].mxu0 }
 0x295   :  { %v245_v34 = vpack.c.bf16 %v239_v32, %v239_v32 }
 0x297   :  { %380 = vmatmul.mubr.msk.bf16.vlgmr.msra.gmra.mrb[4].mxu1 %vm59_vm1, %v245_v34 }
 0x36a   :  { %v301_v36 = vpop.f32.mrb[4].mxu1 }
 0x36b   :  { %v302_v37 = vadd.f32 %v335_v35, %v301_v36  ;;  %v381_v38 = vpop.f32.mrb[5].mxu1 }
 0x36c   :  { %v304_v39 = vpop.f32.mrb[6].mxu1 }
 0x36d   :  { %v382_v40 = vpop.f32.mrb[7].mxu1  ;;  %308 = vst.msk [vmem:[#allocation2] sm:$0x3] %vm307_vm2, %v302_v37 }
 0x36e   :  { %405 = shalt.err (!%p402_p4)
}
 0x36f   :  { %s406_s8 = scalar_lea.hbm %s539_s9, 32 }
 0x370   :  { %p407_p5 = scmp.ne.s32.totalorder %s539_s9, %s406_s8  ;;  %p410_p6 = scmp.lt.u32.totalorder %s406_s8, %s539_s9 }
 0x372   :  { %p412_p7 = pnand %p410_p6, %p407_p5 }
 0x374   :  { %415 = shalt.err (!%p412_p7)
}
 0x375   :  { %318 = dma.vmem_to_hbm [thread:$0]  %s316_s7, 32, %s539_s9, [#allocation3]  }
 0x376   :  { %416 = dma.done.wait [#allocation3], 32  }
 0x377   :  { %417 = vsyncadd [#allocation3], 4294967264 }
 0x378   :  { %322 = vsyncpa [#allocation3], 1 }

</bundles_post_ra>
